<compile_context>
chip_gen: v7x
topology: tpu7x:2x2x1
jax: 0.10.0
libtpu: 0.0.40
codegen_flags: <defaults>
</compile_context>

<pallas_src>
import jax
import jax.numpy as jnp
from jax import lax
from jax.experimental import pallas as pl
from jax.experimental.pallas import tpu as pltpu


# ------------------------------ Pallas kernels -------------------------------


def _phi_g_pool_kernel(xw_ref, wpg_ref, pg_ref):
    """Fused phi/g 1x1 conv + 2x2 max-pool.

    xw_ref : (1, 4, TP, C) f32       4 offsets of each 2x2 window, pooled order
    wpg_ref: (C, C//8 + C//2) bf16   [phi^T | g^T] fused, pre-transposed
    pg_ref : (1, TP, C//8 + C//2) bf16  max over the 4 offsets (== max-pool)
    """
    acc = jnp.dot(xw_ref[0, 0].astype(jnp.bfloat16), wpg_ref[...],
                  preferred_element_type=jnp.float32)
    for j in range(1, 4):
        pj = jnp.dot(xw_ref[0, j].astype(jnp.bfloat16), wpg_ref[...],
                     preferred_element_type=jnp.float32)
        acc = jnp.maximum(acc, pj)
    pg_ref[0] = acc.astype(pg_ref.dtype)


def _attn_kernel(x_ref, phi_ref, g_ref, wth_ref, wo_ref, gamma_ref, out_ref):
    """Query-tiled attention + o-conv + residual.

    x_ref    : (1, TQ, C) f32        query tile of x (permuted spatial order)
    phi_ref  : (1, HW/4, C//8) bf16  pooled phi projection (resident across q)
    g_ref    : (1, HW/4, C//2) bf16  pooled g   projection (resident across q)
    wth_ref  : (C, C//8) bf16        theta weight, pre-transposed
    wo_ref   : (C//2, C) bf16        o weight, pre-transposed
    gamma_ref: (1,) f32 in SMEM
    out_ref  : (1, TQ, C) f32
    """
    gamma = gamma_ref[0]                               # hoisted scalar read
    x2 = x_ref[0]                                      # (TQ, C) f32, reused for residual

    # theta projection (bf16 operands, f32 accumulation on the MXU).
    theta = jnp.dot(x2.astype(jnp.bfloat16), wth_ref[...],
                    preferred_element_type=jnp.float32)            # (TQ, C//8)

    # scores: contract channel axes directly (no in-kernel transpose).
    s = lax.dot_general(theta.astype(jnp.bfloat16), phi_ref[0],
                        (((1,), (1,)), ((), ())),
                        preferred_element_type=jnp.float32)        # (TQ, HW/4)

    # softmax over the pooled-key axis, kept in f32.
    m = jnp.max(s, axis=-1, keepdims=True)
    e = jnp.exp(s - m)
    denom = jnp.sum(e, axis=-1, keepdims=True)
    beta = e * pl.reciprocal(denom, approx=True)                   # EUP slot, ~free

    # attention output, o-conv, residual (residual stays f32).
    o_pre = jnp.dot(beta.astype(jnp.bfloat16), g_ref[0],
                    preferred_element_type=jnp.float32)            # (TQ, C//2)
    o = jnp.dot(o_pre.astype(jnp.bfloat16), wo_ref[...],
                preferred_element_type=jnp.float32)                # (TQ, C)
    out_ref[0] = gamma * o + x2


# --------------------------------- wrapper ------------------------------------


def _pick_tile(total, target):
    """Largest tile <= target that divides `total` and is a multiple of 8,
    falling back to the full extent (always a legal block dim)."""
    t = min(target, total)
    while t >= 8:
        if total % t == 0 and t % 8 == 0:
            return t
        t -= 8
    return total


def attention_forward(x, wth, wph, wg, wo, gamma, *, tq=256, tp=256):
    """x: (B, C, H, W) NCHW f32.  Weights already spectrally normalized and
    flattened to 2-D (out, in).  Returns (B, C, H, W) f32."""
    B, C, H, W = x.shape
    assert H % 2 == 0 and W % 2 == 0 and C % 8 == 0
    ch8, ch2 = C // 8, C // 2
    HW, HW4 = H * W, (H * W) // 4
    tq = _pick_tile(HW, tq)
    tp = _pick_tile(HW4, tp)
    nq, npp = HW // tq, HW4 // tp

    # Single channels-last, 2x2-window-permuted copy of x.  Both kernel inputs
    # are free reshape-views of this one buffer (no duplicated HBM copy).
    #   (B,C,H,W) -> (B,H,W,C) -> (B,H/2,2,W/2,2,C) -> (B,2,2,H/2,W/2,C)
    x_perm = jnp.transpose(
        jnp.transpose(x, (0, 2, 3, 1)).reshape(B, H // 2, 2, W // 2, 2, C),
        (0, 2, 4, 1, 3, 5))
    x_win = x_perm.reshape(B, 4, HW4, C)       # offset-major   (phi/g pass)
    x_flat = x_perm.reshape(B, HW, C)          # query-major    (attention pass)

    # Pre-transposed bf16 weights; phi & g fused along output channels.
    wth_t = jnp.asarray(wth, jnp.float32).T.astype(jnp.bfloat16)            # (C, C//8)
    wpg_t = jnp.concatenate(
        [jnp.asarray(wph, jnp.float32).T, jnp.asarray(wg, jnp.float32).T],
        axis=1).astype(jnp.bfloat16)                                        # (C, 5C/8)
    wo_t = jnp.asarray(wo, jnp.float32).T.astype(jnp.bfloat16)              # (C//2, C)
    gamma_arr = jnp.asarray(gamma, jnp.float32).reshape(1)

    # ---- pass 1: fused phi/g projection + 2x2 max-pool ----
    pg_pool = pl.pallas_call(
        _phi_g_pool_kernel,
        out_shape=jax.ShapeDtypeStruct((B, HW4, ch8 + ch2), jnp.bfloat16),
        grid=(B, npp),
        in_specs=[
            pl.BlockSpec((1, 4, tp, C), lambda b, p: (b, 0, p, 0)),
            pl.BlockSpec((C, ch8 + ch2), lambda b, p: (0, 0)),
        ],
        out_specs=pl.BlockSpec((1, tp, ch8 + ch2), lambda b, p: (b, p, 0)),
        compiler_params=pltpu.CompilerParams(
            dimension_semantics=("parallel", "parallel"),
            vmem_limit_bytes=32 * 1024 * 1024),
    )(x_win, wpg_t)
    phi_p = pg_pool[:, :, :ch8]                # (B, HW/4, C//8) bf16
    g_p = pg_pool[:, :, ch8:]                  # (B, HW/4, C//2) bf16

    # ---- pass 2: query-tiled attention + residual ----
    out_flat = pl.pallas_call(
        _attn_kernel,
        out_shape=jax.ShapeDtypeStruct((B, HW, C), jnp.float32),
        grid=(B, nq),
        in_specs=[
            pl.BlockSpec((1, tq, C), lambda b, q: (b, q, 0)),
            pl.BlockSpec((1, HW4, ch8), lambda b, q: (b, 0, 0)),
            pl.BlockSpec((1, HW4, ch2), lambda b, q: (b, 0, 0)),
            pl.BlockSpec((C, ch8), lambda b, q: (0, 0)),
            pl.BlockSpec((ch2, C), lambda b, q: (0, 0)),
            pl.BlockSpec(memory_space=pltpu.MemorySpace.SMEM),
        ],
        out_specs=pl.BlockSpec((1, tq, C), lambda b, q: (b, q, 0)),
        compiler_params=pltpu.CompilerParams(
            dimension_semantics=("parallel", "parallel"),
            vmem_limit_bytes=32 * 1024 * 1024),
    )(x_flat, phi_p, g_p, wth_t, wo_t, gamma_arr)

    # Undo the window permutation, back to NCHW.
    out = jnp.transpose(out_flat.reshape(B, 2, 2, H // 2, W // 2, C),
                        (0, 3, 1, 4, 2, 5)).reshape(B, H, W, C)
    return jnp.transpose(out, (0, 3, 1, 2))


# ---------------- parameter setup (glue, plain JAX) ---------------------------


def spectral_norm_weight(w4, u, eps=1e-12):
    """One power iteration exactly like SN.W_() with num_svs=num_itrs=1.
    w4: (out, in, 1, 1), u: (1, out). Returns w4 / sigma."""
    out_c = w4.shape[0]
    w = w4.reshape(out_c, -1)                                   # (out, in)
    v = u @ w                                                   # (1, in)
    v = v / jnp.maximum(jnp.linalg.norm(v), eps)                # F.normalize
    u_new = v @ w.T                                             # (1, out)
    u_new = u_new / jnp.maximum(jnp.linalg.norm(u_new), eps)
    sv = (v @ w.T @ u_new.T)[0, 0]
    return w4 / sv


# ---------------- pure-JAX reference (mirrors the torch math, NCHW) -----------


def reference(x, wth, wph, wg, wo, gamma, matmul_dtype=jnp.float32):
    """NCHW reference of Attention.forward.  `matmul_dtype=bfloat16` mirrors the
    kernel's bf16 matmul operands with f32 accumulation."""
    B, C, H, W = x.shape
    md = matmul_dtype

    def conv1x1(t, w):  # t: (B, Ci, H, W), w: (Co, Ci)
        return jnp.einsum('bchw,oc->bohw', t.astype(md), w.astype(md),
                          preferred_element_type=jnp.float32)

    def pool2x2(t):
        B_, O, H_, W_ = t.shape
        return t.reshape(B_, O, H_ // 2, 2, W_ // 2, 2).max(axis=(3, 5))

    theta = conv1x1(x, wth).reshape(B, C // 8, H * W)
    phi = pool2x2(conv1x1(x, wph)).reshape(B, C // 8, H * W // 4)
    g = pool2x2(conv1x1(x, wg)).reshape(B, C // 2, H * W // 4)
    s = jnp.einsum('bct,bcp->btp', theta.astype(md), phi.astype(md),
                   preferred_element_type=jnp.float32)
    beta = jax.nn.softmax(s, axis=-1)
    o_pre = jnp.einsum('bcp,btp->bct', g.astype(md), beta.astype(md),
                       preferred_element_type=jnp.float32)
    o_pre = o_pre.reshape(B, C // 2, H, W)
    o = conv1x1(o_pre, wo)
    return gamma * o + x


if __name__ == "__main__":
    key = jax.random.PRNGKey(0)
    B, ch, H, W = 2, 128, 16, 16           # C=128 keeps the output lane-dense
    ks = jax.random.split(key, 10)

    x = jax.random.normal(ks[0], (B, ch, H, W), jnp.float32)

    def conv_w(k, out_c, in_c):
        # deterministic synthetic init for Conv2d(out_c, in_c, 1, 1) weights
        return jax.random.normal(k, (out_c, in_c, 1, 1), jnp.float32) * 0.05

    w_theta = conv_w(ks[1], ch // 8, ch)
    w_phi = conv_w(ks[2], ch // 8, ch)
    w_g = conv_w(ks[3], ch // 2, ch)
    w_o = conv_w(ks[4], ch, ch // 2)
    u_theta = jax.random.normal(ks[5], (1, ch // 8), jnp.float32)
    u_phi = jax.random.normal(ks[6], (1, ch // 8), jnp.float32)
    u_g = jax.random.normal(ks[7], (1, ch // 2), jnp.float32)
    u_o = jax.random.normal(ks[8], (1, ch), jnp.float32)

    wth = spectral_norm_weight(w_theta, u_theta).reshape(ch // 8, ch)
    wph = spectral_norm_weight(w_phi, u_phi).reshape(ch // 8, ch)
    wg = spectral_norm_weight(w_g, u_g).reshape(ch // 2, ch)
    wo = spectral_norm_weight(w_o, u_o).reshape(ch, ch // 2)

    # Full-path check with gamma=1 (gamma=0 would mask attention-path errors).
    # tq=128 forces a 2-tile query grid so the tiling path is exercised.
    out1 = attention_forward(x, wth, wph, wg, wo, 1.0, tq=128)
    jax.block_until_ready(out1)
    assert out1.shape == (B, ch, H, W)

    att_k = out1 - x
    # (a) tight check vs a reference that mirrors the kernel's bf16 matmul
    #     operands (f32 accumulation); residual difference comes only from
    #     the approx reciprocal and accumulation order.
    att_bf = reference(x, wth, wph, wg, wo, 1.0, matmul_dtype=jnp.bfloat16) - x
    assert jnp.allclose(att_k, att_bf, rtol=2e-2, atol=2e-2), (
        float(jnp.max(jnp.abs(att_k - att_bf))))
    # (b) sanity check vs the pure-f32 reference (bf16-appropriate tolerance).
    att_f32 = reference(x, wth, wph, wg, wo, 1.0) - x
    assert jnp.allclose(att_k, att_f32, rtol=1e-1, atol=1e-1), (
        float(jnp.max(jnp.abs(att_k - att_f32))))

    # Module's actual init (gamma = 0.0): output must equal the input.
    out0 = attention_forward(x, wth, wph, wg, wo, 0.0, tq=128)
    jax.block_until_ready(out0)
    assert jnp.allclose(out0, x, atol=1e-6)

    print("KERNEL_OK")
</pallas_src>

<mosaic_0001>
module attributes {stable_mosaic.version = 11 : i64} {
  func.func @_phi_g_pool_kernel(%arg0: i32, %arg1: i32, %arg2: memref<1x4x64x128xf32, #tpu.memory_space<vmem>>, %arg3: memref<128x80xbf16, #tpu.memory_space<vmem>>, %arg4: memref<1x64x80xbf16, #tpu.memory_space<vmem>>) attributes {dimension_semantics = [#tpu.dimension_semantics<parallel>, #tpu.dimension_semantics<parallel>], iteration_bounds = array<i64: 2, 1>, scalar_prefetch = 0 : i64, scratch_operands = 0 : i64, tpu.core_type = #tpu.core_type<tc>, window_params = [{transform_indices = @transform_0, window_bounds = array<i64: 1, 4, 64, 128>}, {pipeline_mode = #tpu.pipeline_mode<synchronous>, transform_indices = @transform_1, window_bounds = array<i64: 128, 80>}, {transform_indices = @transform_2, window_bounds = array<i64: 1, 64, 80>}]} {
    %c0 = arith.constant 0 : index
    %c0_0 = arith.constant 0 : index
    %c0_1 = arith.constant 0 : index
    %c0_2 = arith.constant 0 : index
    %0 = vector.load %arg2[%c0, %c0_0, %c0_1, %c0_2] : memref<1x4x64x128xf32, #tpu.memory_space<vmem>>, vector<1x1x64x128xf32>
    %1 = vector.shape_cast %0 : vector<1x1x64x128xf32> to vector<64x128xf32>
    %2 = arith.truncf %1 : vector<64x128xf32> to vector<64x128xbf16>
    %c0_3 = arith.constant 0 : index
    %c0_4 = arith.constant 0 : index
    %3 = vector.load %arg3[%c0_3, %c0_4] : memref<128x80xbf16, #tpu.memory_space<vmem>>, vector<128x80xbf16>
    %cst = arith.constant dense<0.000000e+00> : vector<64x80xf32>
    %4 = tpu.matmul %2, %3, %cst {dimension_numbers = #tpu.dot_dimension_numbers<[1], [0], [0], [1], [0, 0, 1, 1], [], []>} : vector<64x128xbf16>, vector<128x80xbf16>, vector<64x80xf32> -> vector<64x80xf32>
    %c0_5 = arith.constant 0 : index
    %c1 = arith.constant 1 : index
    %c0_6 = arith.constant 0 : index
    %c0_7 = arith.constant 0 : index
    %5 = vector.load %arg2[%c0_5, %c1, %c0_6, %c0_7] : memref<1x4x64x128xf32, #tpu.memory_space<vmem>>, vector<1x1x64x128xf32>
    %6 = vector.shape_cast %5 : vector<1x1x64x128xf32> to vector<64x128xf32>
    %7 = arith.truncf %6 : vector<64x128xf32> to vector<64x128xbf16>
    %c0_8 = arith.constant 0 : index
    %c0_9 = arith.constant 0 : index
    %8 = vector.load %arg3[%c0_8, %c0_9] : memref<128x80xbf16, #tpu.memory_space<vmem>>, vector<128x80xbf16>
    %cst_10 = arith.constant dense<0.000000e+00> : vector<64x80xf32>
    %9 = tpu.matmul %7, %8, %cst_10 {dimension_numbers = #tpu.dot_dimension_numbers<[1], [0], [0], [1], [0, 0, 1, 1], [], []>} : vector<64x128xbf16>, vector<128x80xbf16>, vector<64x80xf32> -> vector<64x80xf32>
    %10 = arith.maximumf %4, %9 : vector<64x80xf32>
    %c0_11 = arith.constant 0 : index
    %c2 = arith.constant 2 : index
    %c0_12 = arith.constant 0 : index
    %c0_13 = arith.constant 0 : index
    %11 = vector.load %arg2[%c0_11, %c2, %c0_12, %c0_13] : memref<1x4x64x128xf32, #tpu.memory_space<vmem>>, vector<1x1x64x128xf32>
    %12 = vector.shape_cast %11 : vector<1x1x64x128xf32> to vector<64x128xf32>
    %13 = arith.truncf %12 : vector<64x128xf32> to vector<64x128xbf16>
    %c0_14 = arith.constant 0 : index
    %c0_15 = arith.constant 0 : index
    %14 = vector.load %arg3[%c0_14, %c0_15] : memref<128x80xbf16, #tpu.memory_space<vmem>>, vector<128x80xbf16>
    %cst_16 = arith.constant dense<0.000000e+00> : vector<64x80xf32>
    %15 = tpu.matmul %13, %14, %cst_16 {dimension_numbers = #tpu.dot_dimension_numbers<[1], [0], [0], [1], [0, 0, 1, 1], [], []>} : vector<64x128xbf16>, vector<128x80xbf16>, vector<64x80xf32> -> vector<64x80xf32>
    %16 = arith.maximumf %10, %15 : vector<64x80xf32>
    %c0_17 = arith.constant 0 : index
    %c3 = arith.constant 3 : index
    %c0_18 = arith.constant 0 : index
    %c0_19 = arith.constant 0 : index
    %17 = vector.load %arg2[%c0_17, %c3, %c0_18, %c0_19] : memref<1x4x64x128xf32, #tpu.memory_space<vmem>>, vector<1x1x64x128xf32>
    %18 = vector.shape_cast %17 : vector<1x1x64x128xf32> to vector<64x128xf32>
    %19 = arith.truncf %18 : vector<64x128xf32> to vector<64x128xbf16>
    %c0_20 = arith.constant 0 : index
    %c0_21 = arith.constant 0 : index
    %20 = vector.load %arg3[%c0_20, %c0_21] : memref<128x80xbf16, #tpu.memory_space<vmem>>, vector<128x80xbf16>
    %cst_22 = arith.constant dense<0.000000e+00> : vector<64x80xf32>
    %21 = tpu.matmul %19, %20, %cst_22 {dimension_numbers = #tpu.dot_dimension_numbers<[1], [0], [0], [1], [0, 0, 1, 1], [], []>} : vector<64x128xbf16>, vector<128x80xbf16>, vector<64x80xf32> -> vector<64x80xf32>
    %22 = arith.maximumf %16, %21 : vector<64x80xf32>
    %23 = arith.truncf %22 : vector<64x80xf32> to vector<64x80xbf16>
    %c0_23 = arith.constant 0 : index
    %c0_24 = arith.constant 0 : index
    %c0_25 = arith.constant 0 : index
    %24 = vector.load %arg4[%c0_23, %c0_24, %c0_25] : memref<1x64x80xbf16, #tpu.memory_space<vmem>>, vector<1x64x80xbf16>
    %25 = vector.shape_cast %24 : vector<1x64x80xbf16> to vector<64x80xbf16>
    %26 = vector.shape_cast %23 : vector<64x80xbf16> to vector<1x64x80xbf16>
    tpu.vector_store %arg4[%c0_23, %c0_24, %c0_25], %26 {strides = array<i32>} : memref<1x64x80xbf16, #tpu.memory_space<vmem>>, vector<1x64x80xbf16>,
    return
  }
  func.func @transform_0(%arg0: i32, %arg1: i32) -> (i32, i32, i32, i32) {
    %c0_i32 = arith.constant 0 : i32
    %c0_i32_0 = arith.constant 0 : i32
    %c0_i32_1 = arith.constant 0 : i32
    return %arg0, %c0_i32, %arg1, %c0_i32_0 : i32, i32, i32, i32
  }
  func.func @transform_1(%arg0: i32, %arg1: i32) -> (i32, i32) {
    %c0_i32 = arith.constant 0 : i32
    %c0_i32_0 = arith.constant 0 : i32
    %c0_i32_1 = arith.constant 0 : i32
    return %c0_i32, %c0_i32_0 : i32, i32
  }
  func.func @transform_2(%arg0: i32, %arg1: i32) -> (i32, i32, i32) {
    %c0_i32 = arith.constant 0 : i32
    %c0_i32_0 = arith.constant 0 : i32
    return %arg0, %arg1, %c0_i32 : i32, i32, i32
  }
}

</mosaic_0001>

<bundles_post_ra>
// kernel: tpu_custom_call.1
= control target key start
LH: loop header
LB: loop body
LE: loop exit
PB: predicated region body
PF: predicated region fallthrough
CT: control target
= control target key end

     0   :  { %7 = vsyncpa [#allocation3], 0  ;;  %s1477_s0 = inlined_call_operand.hbm [shape: f32[2,4,64,128], index: 0, kind: input, shape index: {}]   ;;  %s1478_s1 = inlined_call_operand.vmem [shape: bf16[128,80], index: 1, kind: input, shape index: {}]   ;;  %s1479_s2 = inlined_call_operand.hbm [shape: bf16[2,64,80], index: 2, kind: output, shape index: {}]  }
   0x1   :  { %9 = vsyncpa [#allocation3 + $0x1], 0 }
   0x2   :  { %10 = vsyncpa [#allocation4], 0 }
   0x3   :  { %12 = vsyncpa [#allocation4 + $0x1], 0  ;;  %s1144_s9 = smov 0   ;;  %s1146_s10 = smov 0  }
   0x4   :  { %s1148_s11 = smov 0   ;;  %s1150_s12 = smov 0  }
   0x5   :  { %s1152_s13 = smov 0   ;;  %s1154_s14 = smov 0  }
   0x6 LB: > { %s726_s15 = sadd.s32 4294967295, %s1121_s14   ;;  %s727_s16 = sadd.s32 4294967294, %s1121_s14   ;;  %s1121_s14 = sphi %s1154_s14, %s18_s14   ;;  %s1117_s13 = sphi %s1152_s13, %s1494_s13   ;;  %s1113_s12 = sphi %s1150_s12, %s1493_s12   ;;  %s1109_s11 = sphi %s1148_s11, %s1492_s11   ;;  %s1105_s10 = sphi %s1146_s10, %s1491_s10   ;;  %s1101_s9 = sphi %s1144_s9, %s1490_s9  }
   0x7   : > { %s30_s17 = sadd.s32 1, %s1117_s13  ;;  %s39_s18 = sadd.s32 1, %s1109_s11 }
   0x8   : > { %p32_p0 = scmp.ge.s32.totalorder %s30_s17, 2  ;;  %p46_p1 = scmp.ne.s32.totalorder %s1109_s11, %s1105_s10 }
   0x9   : > { %p47_p2 = scmp.eq.s32.totalorder %s1121_s14, 0  ;;  %p52_p3 = scmp.ne.s32.totalorder %s1105_s10, %s1101_s9 }
   0xa   : > { %s1496_s17 = smov (%p32_p0, %s30_s17), 0  ;;  %p53_p5 = scmp.eq.s32.totalorder %s726_s15, 0 }
   0xb   : > { %p1185_p4 = por %p47_p2, %p46_p1  ;;  %s34_s20 = ssub.s32 %s1117_s13, %s1496_s17 }
   0xc   : > { %p99_p6 = scmp.eq.s32.totalorder %s726_s15, 1  ;;  %p37_p7 = scmp.eq.s32.totalorder %s34_s20, 0 }
   0xd   : > { %p1191_p8 = por %p53_p5, %p52_p3  ;;  %p105_p10 = scmp.eq.s32.totalorder %s727_s16, 1 }
   0xe   : > { %p1195_p9 = por %p99_p6, %p46_p1  ;;  %p947_p13 = scmp.lt.s32.totalorder %s1121_s14, 2 }
   0xf   : > { %s1200_s23 = scalar_select %p37_p7, %s1109_s11, %s39_s18  }
  0x10   : > { %s1483_s22 = scalar_select %p1195_p9, 1, 0 }
  0x11   : > { %p1202_p11 = por %p105_p10, %p52_p3  ;;  %s128_s25 = sand.u32 1, %s1109_s11  }
  0x12   : > { %s730_s26 = sshll.u32 %s128_s25, 8  ;;  %s781_s27 = sshll.u32 %s1117_s13, 12 }
  0x13   : > { %s1484_s24 = scalar_select %p1202_p11, 1, 0 }
  0x14   : > { %s1213_s30 = scalar_lea.hbm %s1477_s0, %s781_s27  ;;  %s132_s3 = scalar_lea.vmem [#allocation2], %s730_s26 }
  0x15   : > { %s141_s4 = sshll.u32 %s132_s3, 4  ;;  %p1219_p0 = pnand %p947_p13, %p1185_p4  ;;  %s1215_s4 = int_to_ptr.vmem [resolvable:$true] %s141_s4 }
  0x16   : > { %s1224_s6 = scalar_lea.sflag [#allocation3], %s128_s25  ;;  %s1009_s7 = scalar_lea.hbm %s1213_s30, 4096 }
  0x17   : > { %p1010_p2 = scmp.ne.s32.totalorder %s1213_s30, %s1009_s7  ;;  %p1011_p3 = pneg %p1219_p0 }
  0x18   : > { %s1014_s16 = scalar_lea.hbm %s1477_s0, 8192  ;;  %p1015_p4 = scmp.lt.u32.totalorder %s1213_s30, %s1477_s0 }
  0x19   : > { %p1012_p5 = pnand %p1011_p3, %p1010_p2  ;;  %p1016_p7 = scmp.lt.u32.totalorder %s1014_s16, %s1009_s7 }
  0x1a   : > { %p1018_p13 = scmp.lt.u32.totalorder %s1009_s7, %s1213_s30 }
  0x1b   : > { %p1013_p6 = pneg %p1012_p5  ;;  %p1017_p10 = por %p1016_p7, %p1015_p4 }
  0x1d   : > { %p1019_p12 = por %p1018_p13, %p1017_p10 }
  0x1f   : > { %p1020_p1 = pnand %p1019_p12, %p1013_p6 }
  0x21   : > { %1023 = shalt.err (!%p1020_p1)
}
  0x22   : > { %s1024_s20 = scalar_lea.vmem %s1215_s4, 4096  ;;  %s1123_s25 = smov [#allocation2]  }
  0x23   : > { %p1025_p2 = scmp.ne.s32.totalorder %s1215_s4, %s1024_s20  ;;  %s1029_s26 = sshll.u32 %s1123_s25, 4  ;;  %s1030_s26 = int_to_ptr.vmem [resolvable:$false] %s1029_s26 }
  0x24   : > { %s1031_s27 = scalar_lea.vmem %s1030_s26, 8192  ;;  %p1032_p9 = scmp.lt.s32.totalorder %s1215_s4, %s1030_s26 }
  0x25   : > { %p1027_p5 = pnand %p1025_p2, %p1011_p3  ;;  %p1033_p4 = scmp.lt.s32.totalorder %s1031_s27, %s1024_s20 }
  0x27   : > { %p1028_p11 = pneg %p1027_p5  ;;  %p1034_p7 = por %p1033_p4, %p1032_p9 }
  0x29   : > { %p1035_p10 = pnand %p1034_p7, %p1028_p11 }
  0x2b   : > { %1038 = shalt.err (!%p1035_p10)
}
  0x2c   : > { %s1124_s28 = smov 128   ;;  %s1125_s29 = smov 8  }
  0x2d   : > { %942 = dma.hbm_to_vmem [thread:$0]  (!%p1219_p0), %s1213_s30, 4096, %s1215_s4, %s1224_s6, %s1124_s28, %s1124_s28, %s1125_s29  }
  0x2e   : > { %p149_p12 = scmp.lt.s32.totalorder %s1121_s14, 3  ;;  %p1486_p1 = scmp.ge.s32.totalorder %s1121_s14, 1 }
  0x30   : > { %p150_p3 = pnand %p1486_p1, %p149_p12 }
  0x31   : > { %s1256_s3 = sand.u32 (!%p150_p3), 1, %s1105_s10  }
  0x32   : > { %153 = sbr.rel (%p150_p3) target bundleno = 367 (0x16f), region = 28  ;;  %s734_s7 = sshll.u32 (!%p150_p3), %s1256_s3, 8 }
  0x33   : > { %s156_s8 = scalar_lea.sflag (!%p150_p3), [#allocation3], %s1256_s3  ;;  %s1260_s15 = scalar_lea.vmem (!%p150_p3), [#allocation2], %s734_s7 }
  0x39   : > { %1092 = dma.done.wait (%p1191_p8), %s156_s8, 4096  }
  0x3a   : > { %1094 = vsyncadd (%p1191_p8), %s156_s8, 4294963200  ;;  %v1269_v0 = vld [vmem:[%s1478_s1] sm:$0xff]   ;;  %v1274_v1 = vld [vmem:[%s1478_s1 + $0x8] sm:$0xff]   ;;  %vm614_vm0 = vcmask 650240   ;;  %s790_s4 = sshll.u32 %s1113_s12, 9  ;;  %s624_s12 = scalar_lea.sflag [#allocation4], %s1256_s3 }
  0x3b   : > { %839 = vmatprep.subr.bf16.mxu0 %v1269_v0  ;;  %863 = vmatprep.subr.bf16.mxu1 %v1269_v0  ;;  %v1285_v2 = vld [vmem:[%s1478_s1 + $0x10] sm:$0xff]   ;;  %v1292_v3 = vld [vmem:[%s1478_s1 + $0x18] sm:$0xff]   ;;  %v183_v4 = vld [vmem:[%s1260_s15] sm:$0xff]  ;;  %s1420_s16 = scalar_lea.hbm %s1479_s2, %s790_s4  ;;  %p1487_p9 = scmp.ne.s32.totalorder %s1483_s22, 0 }
  0x3c   : > { %840 = vmatpush3.bf16.msra.mxu0 %v1269_v0  ;;  %864 = vmatpush3.bf16.msra.mxu1 %v1269_v0  ;;  %v184_v5 = vld [vmem:[%s1260_s15 + $0x8] sm:$0xff]  ;;  %v744_v6 = vld [vmem:[%s1260_s15 + $0x40] sm:$0xff]  ;;  %v1325_v12 = vld [vmem:[%s1478_s1 + $0x30] sm:$0xff]   ;;  %s1126_s19 = smov [#allocation5]  }
  0x3d   : > { %841 = vmatprep.subr.bf16.mxu0 %v1274_v1  ;;  %865 = vmatprep.subr.bf16.mxu1 %v1274_v1  ;;  %v191_v7 = vpack.c.bf16 %v184_v5, %v183_v4  ;;  %v745_v8 = vld [vmem:[%s1260_s15 + $0x48] sm:$0xff]  ;;  %v1307_v10 = vld [vmem:[%s1478_s1 + $0x20] sm:$0xff]   ;;  %v1334_v13 = vld [vmem:[%s1478_s1 + $0x38] sm:$0xff]   ;;  %s1043_s20 = sshll.u32 %s1126_s19, 4  ;;  %s1044_s20 = int_to_ptr.vmem [resolvable:$false] %s1043_s20 }
  0x3e   : > { %v333_v9 = vpack.c.bf16 %v745_v8, %v744_v6  ;;  %v1316_v11 = vld [vmem:[%s1478_s1 + $0x28] sm:$0xff]   ;;  %v185_v14 = vld [vmem:[%s1260_s15 + $0x10] sm:$0xff]  ;;  %v186_v15 = vld [vmem:[%s1260_s15 + $0x18] sm:$0xff]  ;;  %s1045_s25 = scalar_lea.vmem %s1044_s20, 1024 }
  0x3f   : > { %855 = vmatprep.mubr.bf16.mxu0 %v191_v7  ;;  %v746_v16 = vld [vmem:[%s1260_s15 + $0x50] sm:$0xff]  ;;  %v747_v17 = vld [vmem:[%s1260_s15 + $0x58] sm:$0xff]  ;;  %v187_v18 = vld [vmem:[%s1260_s15 + $0x20] sm:$0xff]  ;;  %v192_v19 = vpack.c.bf16 %v186_v15, %v185_v14 }
  0x40   : > { %842 = vmatpush3.bf16.msra.mxu0 %v1274_v1  ;;  %866 = vmatpush3.bf16.msra.mxu1 %v1274_v1  ;;  %v334_v20 = vpack.c.bf16 %v747_v17, %v746_v16  ;;  %v188_v21 = vld [vmem:[%s1260_s15 + $0x28] sm:$0xff]  ;;  %v748_v22 = vld [vmem:[%s1260_s15 + $0x60] sm:$0xff]  ;;  %v189_v26 = vld [vmem:[%s1260_s15 + $0x30] sm:$0xff] }
  0x41   : > { %843 = vmatprep.subr.bf16.mxu0 %v1285_v2  ;;  %867 = vmatprep.subr.bf16.mxu1 %v1285_v2  ;;  %v749_v23 = vld [vmem:[%s1260_s15 + $0x68] sm:$0xff]  ;;  %v193_v24 = vpack.c.bf16 %v188_v21, %v187_v18  ;;  %v190_v27 = vld [vmem:[%s1260_s15 + $0x38] sm:$0xff]  ;;  %v750_v28 = vld [vmem:[%s1260_s15 + $0x70] sm:$0xff] }
  0x42   : > { %879 = vmatprep.mubr.bf16.mxu1 %v333_v9  ;;  %v335_v25 = vpack.c.bf16 %v749_v23, %v748_v22  ;;  %v751_v29 = vld [vmem:[%s1260_s15 + $0x78] sm:$0xff]  ;;  %v752_v30 = vld [vmem:[%s1260_s15 + $0x80] sm:$0xff]  ;;  %v194_v31 = vpack.c.bf16 %v190_v27, %v189_v26  ;;  %v753_v33 = vld [vmem:[%s1260_s15 + $0x88] sm:$0xff] }
  0x43   : > { %v336_v32 = vpack.c.bf16 %v751_v29, %v750_v28  ;;  %v760_v34 = vld [vmem:[%s1260_s15 + $0xc0] sm:$0xff]  ;;  %v761_v35 = vld [vmem:[%s1260_s15 + $0xc8] sm:$0xff]  ;;  %v419_v36 = vpack.c.bf16 %v753_v33, %v752_v30  ;;  %v754_v38 = vld [vmem:[%s1260_s15 + $0x90] sm:$0xff] }
  0x44   : > { %844 = vmatpush3.bf16.msra.mxu0 %v1285_v2  ;;  %868 = vmatpush3.bf16.msra.mxu1 %v1285_v2  ;;  %v505_v37 = vpack.c.bf16 %v761_v35, %v760_v34  ;;  %v755_v39 = vld [vmem:[%s1260_s15 + $0x98] sm:$0xff]  ;;  %v762_v40 = vld [vmem:[%s1260_s15 + $0xd0] sm:$0xff]  ;;  %v756_v42 = vld [vmem:[%s1260_s15 + $0xa0] sm:$0xff] }
  0x45   : > { %845 = vmatprep.subr.bf16.mxu0 %v1292_v3  ;;  %869 = vmatprep.subr.bf16.mxu1 %v1292_v3  ;;  %v763_v41 = vld [vmem:[%s1260_s15 + $0xd8] sm:$0xff]  ;;  %v757_v43 = vld [vmem:[%s1260_s15 + $0xa8] sm:$0xff]  ;;  %v764_v44 = vld [vmem:[%s1260_s15 + $0xe0] sm:$0xff]  ;;  %v420_v46 = vpack.c.bf16 %v755_v39, %v754_v38 }
  0x46   : > { %v765_v45 = vld [vmem:[%s1260_s15 + $0xe8] sm:$0xff]  ;;  %v506_v47 = vpack.c.bf16 %v763_v41, %v762_v40  ;;  %v421_v48 = vpack.c.bf16 %v757_v43, %v756_v42  ;;  %v758_v50 = vld [vmem:[%s1260_s15 + $0xb0] sm:$0xff]  ;;  %v759_v51 = vld [vmem:[%s1260_s15 + $0xb8] sm:$0xff] }
  0x47   : > { %v507_v49 = vpack.c.bf16 %v765_v45, %v764_v44  ;;  %v766_v52 = vld [vmem:[%s1260_s15 + $0xf0] sm:$0xff]  ;;  %v767_v53 = vld [vmem:[%s1260_s15 + $0xf8] sm:$0xff]  ;;  %v422_v54 = vpack.c.bf16 %v759_v51, %v758_v50  ;;  %s735_s15 = sshll.u32 %s1256_s3, 5 }
  0x48   : > { %846 = vmatpush3.bf16.msra.mxu0 %v1292_v3  ;;  %870 = vmatpush3.bf16.msra.mxu1 %v1292_v3  ;;  %v508_v55 = vpack.c.bf16 %v767_v53, %v766_v52  ;;  %s1403_s30 = scalar_lea.vmem [#allocation5], %s735_s15 }
  0x49   : > { %847 = vmatprep.subr.bf16.mxu0 %v1307_v10  ;;  %871 = vmatprep.subr.bf16.mxu1 %v1307_v10  ;;  %s639_s5 = sshll.u32 %s1403_s30, 4  ;;  %s1422_s5 = int_to_ptr.vmem [resolvable:$true] %s639_s5 }
  0x4a   : > { %s1039_s18 = scalar_lea.vmem %s1422_s5, 512  ;;  %p1046_p6 = scmp.lt.s32.totalorder %s1422_s5, %s1044_s20 }
  0x4b   : > { %p1040_p8 = scmp.ne.s32.totalorder %s1422_s5, %s1039_s18  ;;  %p1047_p13 = scmp.lt.s32.totalorder %s1045_s25, %s1039_s18 }
  0x4c   : > { %848 = vmatpush3.bf16.msra.mxu0 %v1307_v10  ;;  %872 = vmatpush3.bf16.msra.mxu1 %v1307_v10 }
  0x4d   : > { %849 = vmatprep.subr.bf16.mxu0 %v1316_v11  ;;  %873 = vmatprep.subr.bf16.mxu1 %v1316_v11  ;;  %p1041_p11 = pnand %p1040_p8, %p1487_p9  ;;  %p1048_p2 = por %p1047_p13, %p1046_p6 }
  0x4f   : > { %p1042_p0 = pneg %p1041_p11 }
  0x50   : > { %850 = vmatpush3.bf16.msra.mxu0 %v1316_v11  ;;  %874 = vmatpush3.bf16.msra.mxu1 %v1316_v11 }
  0x51   : > { %851 = vmatprep.subr.bf16.mxu0 %v1325_v12  ;;  %875 = vmatprep.subr.bf16.mxu1 %v1325_v12  ;;  %p1049_p5 = pnand %p1048_p2, %p1042_p0 }
  0x54   : > { %852 = vmatpush3.bf16.msra.mxu0 %v1325_v12  ;;  %876 = vmatpush3.bf16.msra.mxu1 %v1325_v12 }
  0x55   : > { %853 = vmatprep.subr.bf16.mxu0 %v1334_v13  ;;  %877 = vmatprep.subr.bf16.mxu1 %v1334_v13 }
  0x58   : > { %854 = vmatpush3.bf16.msra.mxu0 %v1334_v13  ;;  %878 = vmatpush3.bf16.msra.mxu1 %v1334_v13 }
  0x59   : > { %887 = vmatprep.subr.bf16.mxu0 %v1269_v0  ;;  %911 = vmatprep.subr.bf16.mxu1 %v1269_v0 }
  0x5b   : > { %856 = vmatmul.mubr.bf16.vlgmr.msra.gmra.mrb[0].mxu0 %v192_v19  ;;  %880 = vmatmul.mubr.bf16.vlgmr.msra.gmra.mrb[0].mxu1 %v334_v20 }
  0x5c   : > { %888 = vmatpush3.bf16.msra.mxu0 %v1269_v0  ;;  %912 = vmatpush3.bf16.msra.mxu1 %v1269_v0 }
  0x5d   : > { %889 = vmatprep.subr.bf16.mxu0 %v1274_v1  ;;  %913 = vmatprep.subr.bf16.mxu1 %v1274_v1 }
  0x5e   : > { %859 = vmatprep.mubr.bf16.mxu0 %v193_v24  ;;  %883 = vmatprep.mubr.bf16.mxu1 %v335_v25 }
  0x60   : > { %890 = vmatpush3.bf16.msra.mxu0 %v1274_v1  ;;  %914 = vmatpush3.bf16.msra.mxu1 %v1274_v1 }
  0x61   : > { %891 = vmatprep.subr.bf16.mxu0 %v1285_v2  ;;  %915 = vmatprep.subr.bf16.mxu1 %v1285_v2 }
  0x63   : > { %860 = vmatmul.mubr.bf16.gmra.mrb[4].mxu0 %v194_v31  ;;  %884 = vmatmul.mubr.bf16.gmra.mrb[4].mxu1 %v336_v32 }
  0x64   : > { %892 = vmatpush3.bf16.msra.mxu0 %v1285_v2  ;;  %916 = vmatpush3.bf16.msra.mxu1 %v1285_v2 }
  0x65   : > { %893 = vmatprep.subr.bf16.mxu0 %v1292_v3  ;;  %917 = vmatprep.subr.bf16.mxu1 %v1292_v3 }
  0x66   : > { %903 = vmatprep.mubr.bf16.mxu0 %v419_v36  ;;  %927 = vmatprep.mubr.bf16.mxu1 %v505_v37 }
  0x68   : > { %894 = vmatpush3.bf16.msra.mxu0 %v1292_v3  ;;  %918 = vmatpush3.bf16.msra.mxu1 %v1292_v3 }
  0x69   : > { %895 = vmatprep.subr.bf16.mxu0 %v1307_v10  ;;  %919 = vmatprep.subr.bf16.mxu1 %v1307_v10 }
  0x6c   : > { %896 = vmatpush3.bf16.msra.mxu0 %v1307_v10  ;;  %920 = vmatpush3.bf16.msra.mxu1 %v1307_v10 }
  0x6d   : > { %897 = vmatprep.subr.bf16.mxu0 %v1316_v11  ;;  %921 = vmatprep.subr.bf16.mxu1 %v1316_v11 }
  0x70   : > { %898 = vmatpush3.bf16.msra.mxu0 %v1316_v11  ;;  %922 = vmatpush3.bf16.msra.mxu1 %v1316_v11 }
  0x71   : > { %899 = vmatprep.subr.bf16.mxu0 %v1325_v12  ;;  %923 = vmatprep.subr.bf16.mxu1 %v1325_v12 }
  0x74   : > { %900 = vmatpush3.bf16.msra.mxu0 %v1325_v12  ;;  %924 = vmatpush3.bf16.msra.mxu1 %v1325_v12 }
  0x75   : > { %901 = vmatprep.subr.bf16.mxu0 %v1334_v13  ;;  %925 = vmatprep.subr.bf16.mxu1 %v1334_v13 }
  0x78   : > { %902 = vmatpush3.bf16.msra.mxu0 %v1334_v13  ;;  %926 = vmatpush3.bf16.msra.mxu1 %v1334_v13 }
  0x7b   : > { %904 = vmatmul.mubr.bf16.vlgmr.msra.gmra.mrb[8].mxu0 %v420_v46  ;;  %928 = vmatmul.mubr.bf16.vlgmr.msra.gmra.mrb[8].mxu1 %v506_v47 }
  0x7c   : > { %907 = vmatprep.mubr.bf16.mxu0 %v421_v48  ;;  %931 = vmatprep.mubr.bf16.mxu1 %v507_v49 }
  0x83   : > { %908 = vmatmul.mubr.bf16.gmra.mrb[12].mxu0 %v422_v54  ;;  %932 = vmatmul.mubr.bf16.gmra.mrb[12].mxu1 %v508_v55 }
 0x12e   : > { %v857_v56 = vpop.f32.mrb[0].mxu0  ;;  %v881_v57 = vpop.f32.mrb[0].mxu1 }
 0x12f   : > { %v404_v58 = vmax.f32 %v857_v56, %v881_v57  ;;  %v293_v59 = vpop.f32.mrb[1].mxu0  ;;  %v371_v60 = vpop.f32.mrb[1].mxu1 }
 0x130   : > { %v402_v61 = vmax.f32 %v293_v59, %v371_v60  ;;  %v858_v62 = vpop.f32.mrb[2].mxu0  ;;  %v882_v63 = vpop.f32.mrb[2].mxu1 }
 0x131   : > { %v405_v0 = vmax.f32 %v858_v62, %v882_v63  ;;  %v296_v1 = vpop.f32.mrb[3].mxu0  ;;  %v374_v2 = vpop.f32.mrb[3].mxu1 }
 0x132   : > { %v403_v3 = vmax.f32 %v296_v1, %v374_v2 }
 0x136   : > { %v861_v4 = vpop.f32.mrb[4].mxu0  ;;  %v885_v5 = vpop.f32.mrb[4].mxu1 }
 0x137   : > { %v408_v6 = vmax.f32 %v861_v4, %v885_v5  ;;  %v309_v7 = vpop.f32.mrb[5].mxu0  ;;  %v387_v8 = vpop.f32.mrb[5].mxu1 }
 0x138   : > { %v406_v9 = vmax.f32 %v309_v7, %v387_v8  ;;  %v862_v10 = vpop.f32.mrb[6].mxu0  ;;  %v886_v11 = vpop.f32.mrb[6].mxu1 }
 0x139   : > { %v409_v12 = vmax.f32 %v862_v10, %v886_v11  ;;  %v312_v13 = vpop.f32.mrb[7].mxu0  ;;  %v390_v14 = vpop.f32.mrb[7].mxu1 }
 0x13a   : > { %v407_v15 = vmax.f32 %v312_v13, %v390_v14 }
 0x14e   : > { %v905_v16 = vpop.f32.mrb[8].mxu0  ;;  %v929_v17 = vpop.f32.mrb[8].mxu1 }
 0x14f   : > { %v490_v18 = vmax.f32 %v404_v58, %v905_v16  ;;  %v457_v19 = vpop.f32.mrb[9].mxu0  ;;  %v543_v20 = vpop.f32.mrb[9].mxu1 }
 0x150   : > { %v488_v21 = vmax.f32 %v402_v61, %v457_v19  ;;  %v906_v22 = vpop.f32.mrb[10].mxu0  ;;  %v930_v23 = vpop.f32.mrb[10].mxu1 }
 0x151   : > { %v576_v24 = vmax.f32 %v490_v18, %v929_v17  ;;  %v491_v25 = vmax.f32 %v405_v0, %v906_v22  ;;  %v460_v26 = vpop.f32.mrb[11].mxu0  ;;  %v546_v27 = vpop.f32.mrb[11].mxu1 }
 0x152   : > { %v574_v28 = vmax.f32 %v488_v21, %v543_v20  ;;  %v489_v29 = vmax.f32 %v403_v3, %v460_v26 }
 0x153   : > { %v784_v30 = vpack.c.bf16 %v576_v24, %v576_v24  ;;  %v577_v31 = vmax.f32 %v491_v25, %v930_v23 }
 0x154   : > { %v782_v32 = vpack.c.bf16 %v574_v28, %v574_v28  ;;  %v575_v33 = vmax.f32 %v489_v29, %v546_v27 }
 0x155   : > { %617 = vst.msk [vmem:[%s1403_s30 + $0x8] sm:$0xf] %vm614_vm0, %v784_v30  ;;  %v785_v34 = vpack.c.bf16 %v577_v31, %v577_v31 }
 0x156   : > { %615 = vst.msk [vmem:[%s1403_s30] sm:$0xf] %vm614_vm0, %v782_v32  ;;  %v783_v35 = vpack.c.bf16 %v575_v33, %v575_v33  ;;  %v909_v36 = vpop.f32.mrb[12].mxu0  ;;  %v933_v37 = vpop.f32.mrb[12].mxu1 }
 0x157   : > { %618 = vst.msk [vmem:[%s1403_s30 + $0xc] sm:$0xf] %vm614_vm0, %v785_v34  ;;  %v494_v38 = vmax.f32 %v408_v6, %v909_v36  ;;  %v473_v39 = vpop.f32.mrb[13].mxu0  ;;  %v559_v40 = vpop.f32.mrb[13].mxu1 }
 0x158   : > { %616 = vst.msk [vmem:[%s1403_s30 + $0x4] sm:$0xf] %vm614_vm0, %v783_v35  ;;  %v492_v41 = vmax.f32 %v406_v9, %v473_v39  ;;  %v910_v42 = vpop.f32.mrb[14].mxu0  ;;  %v934_v43 = vpop.f32.mrb[14].mxu1 }
 0x159   : > { %v580_v44 = vmax.f32 %v494_v38, %v933_v37  ;;  %v495_v45 = vmax.f32 %v409_v12, %v910_v42  ;;  %v476_v46 = vpop.f32.mrb[15].mxu0  ;;  %v562_v47 = vpop.f32.mrb[15].mxu1 }
 0x15a   : > { %v578_v48 = vmax.f32 %v492_v41, %v559_v40  ;;  %v493_v49 = vmax.f32 %v407_v15, %v476_v46 }
 0x15b   : > { %v788_v50 = vpack.c.bf16 %v580_v44, %v580_v44  ;;  %v581_v51 = vmax.f32 %v495_v45, %v934_v43 }
 0x15c   : > { %v786_v52 = vpack.c.bf16 %v578_v48, %v578_v48  ;;  %v579_v53 = vmax.f32 %v493_v49, %v562_v47 }
 0x15d   : > { %621 = vst.msk [vmem:[%s1403_s30 + $0x18] sm:$0xf] %vm614_vm0, %v788_v50  ;;  %v789_v54 = vpack.c.bf16 %v581_v51, %v581_v51 }
 0x15e   : > { %619 = vst.msk [vmem:[%s1403_s30 + $0x10] sm:$0xf] %vm614_vm0, %v786_v52  ;;  %v787_v55 = vpack.c.bf16 %v579_v53, %v579_v53 }
 0x15f   : > { %622 = vst.msk [vmem:[%s1403_s30 + $0x1c] sm:$0xf] %vm614_vm0, %v789_v54 }
 0x160   : > { %620 = vst.msk [vmem:[%s1403_s30 + $0x14] sm:$0xf] %vm614_vm0, %v787_v55 }
 0x161   : > { %1052 = shalt.err (!%p1049_p5)
}
 0x162   : > { %s1053_s26 = scalar_lea.hbm %s1420_s16, 512  ;;  %s1057_s29 = scalar_lea.hbm %s1479_s2, 1024 }
 0x163   : > { %p1054_p4 = scmp.ne.s32.totalorder %s1420_s16, %s1053_s26  ;;  %p1058_p12 = scmp.lt.u32.totalorder %s1420_s16, %s1479_s2 }
 0x164   : > { %p1059_p1 = scmp.lt.u32.totalorder %s1057_s29, %s1053_s26  ;;  %p1061_p8 = scmp.lt.u32.totalorder %s1053_s26, %s1420_s16 }
 0x165   : > { %p1055_p7 = pnand %p1054_p4, %p1487_p9 }
 0x166   : > { %p1060_p3 = por %p1059_p1, %p1058_p12 }
 0x167   : > { %p1056_p10 = pneg %p1055_p7 }
 0x168   : > { %p1062_p11 = por %p1061_p8, %p1060_p3 }
 0x16a   : > { %p1063_p0 = pnand %p1062_p11, %p1056_p10 }
 0x16c   : > { %1066 = shalt.err (!%p1063_p0)
}
 0x16d   : > { %s1127_s15 = smov 64   ;;  %s1128_s30 = smov 4  }
 0x16e   : > { %937 = dma.vmem_to_hbm [thread:$0]  (%p1487_p9), %s1422_s5, 512, %s1420_s16, %s624_s12, %s1127_s15, %s1127_s15, %s1128_s30  }
 0x16f PF: > { %s654_s4 = sand.u32 1, %s1101_s9   ;;  %p1488_p6 = scmp.ne.s32.totalorder %s1484_s24, 0 }
 0x170   : > { %p1489_p13 = scmp.ge.s32.totalorder %s1121_s14, 2  ;;  %s655_s6 = scalar_lea.sflag [#allocation4], %s654_s4 }
 0x172   : > { %p944_p2 = pnand %p1489_p13, %p1488_p6 }
 0x174   : > { %1096 = dma.done.wait (!%p944_p2), %s655_s6, 512  }
 0x175   : > { %1098 = vsyncadd (!%p944_p2), %s655_s6, 4294966784  ;;  %s18_s14 = sadd.s32 1, %s1121_s14   ;;  %s1490_s9 = smov %s1105_s10 }
 0x176   : > { %p15_p5 = scmp.ge.s32.totalorder %s18_s14, 4   ;;  %s1491_s10 = smov %s1109_s11 }
 0x177   : > { %s1492_s11 = smov %s1200_s23  ;;  %s1493_s12 = smov %s1117_s13 }
 0x178   : > { %s1494_s13 = smov %s1496_s17  ;;  %17 = sbr.rel (!%p15_p5) target bundleno = 6 (0x6), region = 76 }
 0x17f   :  { %660 = vsyncpa [#allocation3], 1 }
 0x180   :  { %662 = vsyncpa [#allocation3 + $0x1], 1 }
 0x181   :  { %663 = vsyncpa [#allocation4], 1 }
 0x182   :  { %665 = vsyncpa [#allocation4 + $0x1], 1 }

</bundles_post_ra>
